<compile_context>
chip_gen: v7x
topology: tpu7x:2x2x1
jax: 0.10.0
libtpu: 0.0.40
codegen_flags: <defaults>
</compile_context>

<pallas_src>
import jax
import jax.numpy as jnp
from jax.experimental import pallas as pl
from jax.experimental.pallas import tpu as pltpu


# ----------------------------------------------------------------------------
# Pallas kernel: fused attention-gate over one [NB, *, TP] (batch, pixel) slab.
# ----------------------------------------------------------------------------
def _attention_gate_kernel(g_ref, s_ref,
                           wg_ref, ws_ref, b_in_ref,
                           wo_ref, bo_ref,
                           o_ref):
    # g_ref   : [NB, Cg,   TP]   channel-major pixel slab of g
    # s_ref   : [NB, Cs,   TP]   channel-major pixel slab of s (Cs == outc)
    # wg_ref  : [outc, Cg]       BN-folded 1x1 conv weight for g (transposed)
    # ws_ref  : [outc, Cs]       BN-folded 1x1 conv weight for s (transposed)
    # b_in_ref: [outc, 1]        combined bias (bg + bs), f32
    # wo_ref  : [outc, outc]     output 1x1 conv weight (transposed)
    # bo_ref  : [outc, 1]        output bias, f32
    # o_ref   : [NB, outc, TP]
    nb = g_ref.shape[0]

    g = g_ref[...]                       # native dtype straight to the MXU
    s = s_ref[...]

    # Broadcast the tiny weight matrices across the batch block -> standard batched
    # matmul ('boc,bct->bot'), keeping channels on sublanes / pixels on lanes.
    wg = jnp.broadcast_to(wg_ref[...], (nb,) + wg_ref.shape)
    ws = jnp.broadcast_to(ws_ref[...], (nb,) + ws_ref.shape)
    wo = jnp.broadcast_to(wo_ref[...], (nb,) + wo_ref.shape)

    h = (jnp.einsum('boc,bct->bot', wg, g, preferred_element_type=jnp.float32)
         + jnp.einsum('boc,bct->bot', ws, s, preferred_element_type=jnp.float32)
         + b_in_ref[...][None])
    h = jnp.maximum(h, 0.0)                                         # ReLU (VPU)

    z = (jnp.einsum('boc,bct->bot', wo, h.astype(wo.dtype),
                    preferred_element_type=jnp.float32)
         + bo_ref[...][None])
    att = 0.5 * jnp.tanh(0.5 * z) + 0.5                             # sigmoid on the EUP

    o_ref[...] = (att * s.astype(jnp.float32)).astype(o_ref.dtype)


# ----------------------------------------------------------------------------
# Tile selection: budget double-buffered blocks (+ f32 intermediates) in VMEM,
# amortize per-grid-step overhead over pixels AND batch items.
# ----------------------------------------------------------------------------
def _choose_tiles(N, Cg, Cs, outc, HW, in_itemsize, out_itemsize,
                  block_budget_bytes):
    # VMEM bytes per (batch item, pixel lane) per grid step:
    #   2x-buffered g + s input blocks, 2x-buffered output block,
    #   ~4 live f32 intermediates of width outc (h, z, att, product).
    per_bp = (2 * (Cg + Cs) * in_itemsize
              + 2 * outc * out_itemsize
              + 4 * outc * 4)
    target = max(256, block_budget_bytes // per_bp)   # (batch x pixel) slots per step
    if HW <= target:
        tp = HW                                       # full pixel extent (any size ok)
        nb = min(N, max(1, target // HW))             # batch-block small-H*W levels
    else:
        tp = max(128, (target // 128) * 128)          # lane-dense multiple of 128
        nb = 1
    # Keep at least two grid steps when possible so both v7x TensorCores get work.
    if pl.cdiv(N, nb) * pl.cdiv(HW, tp) < 2 and N > 1:
        nb = (N + 1) // 2
    return nb, tp


def attention_gate_pallas(g, s, params, *,
                          block_budget_bytes=16 * 1024 * 1024,
                          tile_p=None, batch_block=None):
    """g: [N, Cg, H, W], s: [N, Cs, H, W] (NCHW, like PyTorch). Returns [N, Cs, H, W]."""
    N, Cg, H, W = g.shape
    Ns, Cs, Hs, Ws = s.shape
    assert (Ns, Hs, Ws) == (N, H, W)
    outc = params["wgT"].shape[0]
    assert Cs == outc, "broadcast `att * s` requires outc == s-channels"

    HW = H * W
    g3 = g.reshape(N, Cg, HW)          # pure metadata reshape, no transpose
    s3 = s.reshape(N, Cs, HW)

    # Compute dtype follows the activations: bf16 in -> bf16 MXU operands + bf16 out.
    # BN folding stays f32; only the final folded weights are cast. Biases stay f32.
    bf16_io = (g.dtype == jnp.bfloat16) and (s.dtype == jnp.bfloat16)
    compute_dtype = jnp.bfloat16 if bf16_io else jnp.float32
    wgT = params["wgT"].astype(compute_dtype)                    # [outc, Cg]
    wsT = params["wsT"].astype(compute_dtype)                    # [outc, Cs]
    woT = params["woT"].astype(compute_dtype)                    # [outc, outc]
    b_in = (params["bg"] + params["bs"]).astype(jnp.float32).reshape(outc, 1)
    bo = params["bo"].astype(jnp.float32).reshape(outc, 1)

    itemsize = jnp.dtype(s.dtype).itemsize
    nb, tp = _choose_tiles(N, Cg, Cs, outc, HW,
                           in_itemsize=itemsize, out_itemsize=itemsize,
                           block_budget_bytes=block_budget_bytes)
    if tile_p is not None:
        tp = tile_p
    if batch_block is not None:
        nb = batch_block
    assert tp == HW or tp % 128 == 0, "pixel tile must be full H*W or a multiple of 128"

    grid = (pl.cdiv(N, nb), pl.cdiv(HW, tp))
    weight_spec = lambda shape: pl.BlockSpec(shape, lambda n, p: (0, 0))

    out3 = pl.pallas_call(
        _attention_gate_kernel,
        out_shape=jax.ShapeDtypeStruct((N, outc, HW), s.dtype),
        grid_spec=pltpu.PrefetchScalarGridSpec(
            num_scalar_prefetch=0,
            grid=grid,
            in_specs=[
                pl.BlockSpec((nb, Cg, tp), lambda n, p: (n, 0, p)),   # g slab
                pl.BlockSpec((nb, Cs, tp), lambda n, p: (n, 0, p)),   # s slab
                weight_spec((outc, Cg)),                              # wgT (VMEM-stationary)
                weight_spec((outc, Cs)),                              # wsT
                weight_spec((outc, 1)),                               # b_in
                weight_spec((outc, outc)),                            # woT
                weight_spec((outc, 1)),                               # bo
            ],
            out_specs=pl.BlockSpec((nb, outc, tp), lambda n, p: (n, 0, p)),
        ),
        compiler_params=pltpu.CompilerParams(
            dimension_semantics=("parallel", "parallel"),
            vmem_limit_bytes=32 * 1024 * 1024,
        ),
    )(g3, s3, wgT, wsT, b_in, woT, bo)

    # [N, outc, H*W] -> NCHW by reshape only (no transpose).
    return out3.reshape(N, outc, H, W)


# ----------------------------------------------------------------------------
# Deterministic parameter construction (conv + BatchNorm folded, eval mode).
# Weights are built directly in the transposed-for-kernel layout [outc, cin] (f32).
# ----------------------------------------------------------------------------
def make_params(key, inc, outc, eps=1e-5):
    inc0, inc1 = inc
    ks = jax.random.split(key, 10)

    def fold_conv_bn(wk, bk, gk, betak, cin):
        w = jax.random.normal(wk, (outc, cin), jnp.float32) * 0.1
        b = jax.random.normal(bk, (outc,), jnp.float32) * 0.1
        gamma = 1.0 + 0.1 * jax.random.normal(gk, (outc,), jnp.float32)
        beta = 0.1 * jax.random.normal(betak, (outc,), jnp.float32)
        mean = 0.05 * jnp.arange(outc, dtype=jnp.float32)
        var = 1.0 + 0.02 * jnp.arange(outc, dtype=jnp.float32)
        scale = gamma / jnp.sqrt(var + eps)
        wT_eff = w * scale[:, None]                 # [outc, cin] for W @ x
        b_eff = (b - mean) * scale + beta
        return wT_eff, b_eff

    wgT, bg = fold_conv_bn(ks[0], ks[1], ks[2], ks[3], inc0)
    wsT, bs = fold_conv_bn(ks[4], ks[5], ks[6], ks[7], inc1)

    woT = jax.random.normal(ks[8], (outc, outc), jnp.float32) * 0.1
    bo = jax.random.normal(ks[9], (outc,), jnp.float32) * 0.1

    return {"wgT": wgT, "bg": bg, "wsT": wsT, "bs": bs, "woT": woT, "bo": bo}


# ----------------------------------------------------------------------------
# Plain-JAX reference (same math, NCHW end-to-end, f32).
# ----------------------------------------------------------------------------
def attention_gate_ref(g, s, params):
    def conv1x1(x, wT, b):
        return jnp.einsum("oc,nchw->nohw", wT, x) + b[None, :, None, None]

    a = conv1x1(g, params["wgT"], params["bg"])
    b = conv1x1(s, params["wsT"], params["bs"])
    h = jnp.maximum(a + b, 0.0)
    att = jax.nn.sigmoid(conv1x1(h, params["woT"], params["bo"]))
    return att * s


if __name__ == "__main__":
    key = jax.random.PRNGKey(0)
    k_g, k_s, k_p, k_g2, k_s2, k_g3, k_s3 = jax.random.split(key, 7)

    inc = (4, 8)
    outc = 8
    params = make_params(k_p, inc, outc)

    # --- Test 1: basic f32, H*W=256 (auto tiling -> nb=1, tp=256, grid (2,1)) ------
    N, H, W = 2, 16, 16
    g = jax.random.normal(k_g, (N, inc[0], H, W), jnp.float32)
    s = jax.random.normal(k_s, (N, inc[1], H, W), jnp.float32)
    out = jax.block_until_ready(attention_gate_pallas(g, s, params))
    ref = attention_gate_ref(g, s, params)
    assert out.shape == (N, outc, H, W)
    assert jnp.allclose(out, ref, atol=1e-5, rtol=1e-5), "f32 mismatch vs reference"

    # --- Test 2: ragged pixel tail (H*W=300, not a multiple of 128) + batch block --
    N2, H2, W2 = 4, 15, 20
    g2 = jax.random.normal(k_g2, (N2, inc[0], H2, W2), jnp.float32)
    s2 = jax.random.normal(k_s2, (N2, inc[1], H2, W2), jnp.float32)
    out2 = jax.block_until_ready(
        attention_gate_pallas(g2, s2, params, tile_p=128, batch_block=2))
    ref2 = attention_gate_ref(g2, s2, params)
    assert jnp.allclose(out2, ref2, atol=1e-5, rtol=1e-5), "ragged-tail mismatch"

    # --- Test 3: small-H*W level -> automatic batch blocking (nb=2, grid (2,1)) ----
    N3, H3, W3 = 4, 8, 8
    g_t3 = jax.random.normal(k_g3, (N3, inc[0], H3, W3), jnp.float32)
    s_t3 = jax.random.normal(k_s3, (N3, inc[1], H3, W3), jnp.float32)
    out_t3 = jax.block_until_ready(attention_gate_pallas(g_t3, s_t3, params))
    ref_t3 = attention_gate_ref(g_t3, s_t3, params)
    assert jnp.allclose(out_t3, ref_t3, atol=1e-5, rtol=1e-5), "batch-block mismatch"

    # --- Test 4: bf16 activations -> bf16 MXU operands and bf16 output -------------
    g_bf = g.astype(jnp.bfloat16)
    s_bf = s.astype(jnp.bfloat16)
    out_bf = jax.block_until_ready(attention_gate_pallas(g_bf, s_bf, params))
    assert out_bf.dtype == jnp.bfloat16
    ref_bf = attention_gate_ref(g_bf.astype(jnp.float32),
                                s_bf.astype(jnp.float32), params)
    assert jnp.allclose(out_bf.astype(jnp.float32), ref_bf,
                        atol=5e-2, rtol=1e-1), "bf16 mismatch vs reference"

    print("KERNEL_OK")
</pallas_src>

<mosaic_0001>
module attributes {stable_mosaic.version = 11 : i64} {
  func.func @_attention_gate_kernel(%arg0: i32, %arg1: i32, %arg2: memref<1x4x256xf32, #tpu.memory_space<vmem>>, %arg3: memref<1x8x256xf32, #tpu.memory_space<vmem>>, %arg4: memref<8x4xf32, #tpu.memory_space<vmem>>, %arg5: memref<8x8xf32, #tpu.memory_space<vmem>>, %arg6: memref<8x1xf32, #tpu.memory_space<vmem>>, %arg7: memref<8x8xf32, #tpu.memory_space<vmem>>, %arg8: memref<8x1xf32, #tpu.memory_space<vmem>>, %arg9: memref<1x8x256xf32, #tpu.memory_space<vmem>>) attributes {dimension_semantics = [#tpu.dimension_semantics<parallel>, #tpu.dimension_semantics<parallel>], iteration_bounds = array<i64: 2, 1>, scalar_prefetch = 0 : i64, scratch_operands = 0 : i64, tpu.core_type = #tpu.core_type<tc>, window_params = [{transform_indices = @transform_0, window_bounds = array<i64: 1, 4, 256>}, {transform_indices = @transform_1, window_bounds = array<i64: 1, 8, 256>}, {pipeline_mode = #tpu.pipeline_mode<synchronous>, transform_indices = @transform_2, window_bounds = array<i64: 8, 4>}, {pipeline_mode = #tpu.pipeline_mode<synchronous>, transform_indices = @transform_3, window_bounds = array<i64: 8, 8>}, {pipeline_mode = #tpu.pipeline_mode<synchronous>, transform_indices = @transform_4, window_bounds = array<i64: 8, 1>}, {pipeline_mode = #tpu.pipeline_mode<synchronous>, transform_indices = @transform_5, window_bounds = array<i64: 8, 8>}, {pipeline_mode = #tpu.pipeline_mode<synchronous>, transform_indices = @transform_6, window_bounds = array<i64: 8, 1>}, {transform_indices = @transform_7, window_bounds = array<i64: 1, 8, 256>}]} {
    %c0 = arith.constant 0 : index
    %c0_0 = arith.constant 0 : index
    %c0_1 = arith.constant 0 : index
    %0 = vector.load %arg2[%c0, %c0_0, %c0_1] : memref<1x4x256xf32, #tpu.memory_space<vmem>>, vector<1x4x256xf32>
    %c0_2 = arith.constant 0 : index
    %c0_3 = arith.constant 0 : index
    %c0_4 = arith.constant 0 : index
    %1 = vector.load %arg3[%c0_2, %c0_3, %c0_4] : memref<1x8x256xf32, #tpu.memory_space<vmem>>, vector<1x8x256xf32>
    %c0_5 = arith.constant 0 : index
    %c0_6 = arith.constant 0 : index
    %2 = vector.load %arg4[%c0_5, %c0_6] : memref<8x4xf32, #tpu.memory_space<vmem>>, vector<8x4xf32>
    %3 = vector.shape_cast %2 : vector<8x4xf32> to vector<1x8x4xf32>
    %c0_7 = arith.constant 0 : index
    %c0_8 = arith.constant 0 : index
    %4 = vector.load %arg5[%c0_7, %c0_8] : memref<8x8xf32, #tpu.memory_space<vmem>>, vector<8x8xf32>
    %5 = vector.shape_cast %4 : vector<8x8xf32> to vector<1x8x8xf32>
    %c0_9 = arith.constant 0 : index
    %c0_10 = arith.constant 0 : index
    %6 = vector.load %arg7[%c0_9, %c0_10] : memref<8x8xf32, #tpu.memory_space<vmem>>, vector<8x8xf32>
    %7 = vector.shape_cast %6 : vector<8x8xf32> to vector<1x8x8xf32>
    "tpu.trace_start"() <{level = 10 : i32, message = "boc,bct->bot"}> : () -> ()
    %cst = arith.constant dense<0.000000e+00> : vector<1x8x256xf32>
    %8 = tpu.matmul %3, %0, %cst {dimension_numbers = #tpu.dot_dimension_numbers<[2], [1], [1], [2], [0, 0, 0, 1, 1, 2], [0], [0]>} : vector<1x8x4xf32>, vector<1x4x256xf32>, vector<1x8x256xf32> -> vector<1x8x256xf32>
    %cst_11 = arith.constant dense<0.000000e+00> : vector<1x8x256xf32>
    %9 = tpu.matmul %5, %1, %cst_11 {dimension_numbers = #tpu.dot_dimension_numbers<[2], [1], [1], [2], [0, 0, 0, 1, 1, 2], [0], [0]>} : vector<1x8x8xf32>, vector<1x8x256xf32>, vector<1x8x256xf32> -> vector<1x8x256xf32>
    "tpu.trace_stop"() : () -> ()
    %10 = arith.addf %8, %9 : vector<1x8x256xf32>
    %c0_12 = arith.constant 0 : index
    %c0_13 = arith.constant 0 : index
    %11 = vector.load %arg6[%c0_12, %c0_13] : memref<8x1xf32, #tpu.memory_space<vmem>>, vector<8x1xf32>
    %12 = vector.shape_cast %11 : vector<8x1xf32> to vector<1x8x1xf32>
    %13 = vector.broadcast %12 : vector<1x8x1xf32> to vector<1x8x256xf32>
    %14 = arith.addf %10, %13 : vector<1x8x256xf32>
    %cst_14 = arith.constant 0.000000e+00 : f32
    %15 = vector.broadcast %cst_14 : f32 to vector<1x8x256xf32>
    %16 = arith.maximumf %14, %15 : vector<1x8x256xf32>
    "tpu.trace_start"() <{level = 10 : i32, message = "boc,bct->bot"}> : () -> ()
    %cst_15 = arith.constant dense<0.000000e+00> : vector<1x8x256xf32>
    %17 = tpu.matmul %7, %16, %cst_15 {dimension_numbers = #tpu.dot_dimension_numbers<[2], [1], [1], [2], [0, 0, 0, 1, 1, 2], [0], [0]>} : vector<1x8x8xf32>, vector<1x8x256xf32>, vector<1x8x256xf32> -> vector<1x8x256xf32>
    "tpu.trace_stop"() : () -> ()
    %c0_16 = arith.constant 0 : index
    %c0_17 = arith.constant 0 : index
    %18 = vector.load %arg8[%c0_16, %c0_17] : memref<8x1xf32, #tpu.memory_space<vmem>>, vector<8x1xf32>
    %19 = vector.shape_cast %18 : vector<8x1xf32> to vector<1x8x1xf32>
    %20 = vector.broadcast %19 : vector<1x8x1xf32> to vector<1x8x256xf32>
    %21 = arith.addf %17, %20 : vector<1x8x256xf32>
    %cst_18 = arith.constant 5.000000e-01 : f32
    %22 = vector.broadcast %cst_18 : f32 to vector<1x8x256xf32>
    %23 = arith.mulf %22, %21 : vector<1x8x256xf32>
    %24 = math.tanh %23 : vector<1x8x256xf32>
    %cst_19 = arith.constant 5.000000e-01 : f32
    %25 = vector.broadcast %cst_19 : f32 to vector<1x8x256xf32>
    %26 = arith.mulf %25, %24 : vector<1x8x256xf32>
    %cst_20 = arith.constant 5.000000e-01 : f32
    %27 = vector.broadcast %cst_20 : f32 to vector<1x8x256xf32>
    %28 = arith.addf %26, %27 : vector<1x8x256xf32>
    %29 = arith.mulf %28, %1 : vector<1x8x256xf32>
    %c0_21 = arith.constant 0 : index
    %c0_22 = arith.constant 0 : index
    %c0_23 = arith.constant 0 : index
    %30 = vector.load %arg9[%c0_21, %c0_22, %c0_23] : memref<1x8x256xf32, #tpu.memory_space<vmem>>, vector<1x8x256xf32>
    tpu.vector_store %arg9[%c0_21, %c0_22, %c0_23], %29 {strides = array<i32>} : memref<1x8x256xf32, #tpu.memory_space<vmem>>, vector<1x8x256xf32>,
    return
  }
  func.func @transform_0(%arg0: i32, %arg1: i32) -> (i32, i32, i32) {
    %c0_i32 = arith.constant 0 : i32
    %c0_i32_0 = arith.constant 0 : i32
    return %arg0, %c0_i32, %arg1 : i32, i32, i32
  }
  func.func @transform_1(%arg0: i32, %arg1: i32) -> (i32, i32, i32) {
    %c0_i32 = arith.constant 0 : i32
    %c0_i32_0 = arith.constant 0 : i32
    return %arg0, %c0_i32, %arg1 : i32, i32, i32
  }
  func.func @transform_2(%arg0: i32, %arg1: i32) -> (i32, i32) {
    %c0_i32 = arith.constant 0 : i32
    %c0_i32_0 = arith.constant 0 : i32
    %c0_i32_1 = arith.constant 0 : i32
    return %c0_i32, %c0_i32_0 : i32, i32
  }
  func.func @transform_3(%arg0: i32, %arg1: i32) -> (i32, i32) {
    %c0_i32 = arith.constant 0 : i32
    %c0_i32_0 = arith.constant 0 : i32
    %c0_i32_1 = arith.constant 0 : i32
    return %c0_i32, %c0_i32_0 : i32, i32
  }
  func.func @transform_4(%arg0: i32, %arg1: i32) -> (i32, i32) {
    %c0_i32 = arith.constant 0 : i32
    %c0_i32_0 = arith.constant 0 : i32
    %c0_i32_1 = arith.constant 0 : i32
    return %c0_i32, %c0_i32_0 : i32, i32
  }
  func.func @transform_5(%arg0: i32, %arg1: i32) -> (i32, i32) {
    %c0_i32 = arith.constant 0 : i32
    %c0_i32_0 = arith.constant 0 : i32
    %c0_i32_1 = arith.constant 0 : i32
    return %c0_i32, %c0_i32_0 : i32, i32
  }
  func.func @transform_6(%arg0: i32, %arg1: i32) -> (i32, i32) {
    %c0_i32 = arith.constant 0 : i32
    %c0_i32_0 = arith.constant 0 : i32
    %c0_i32_1 = arith.constant 0 : i32
    return %c0_i32, %c0_i32_0 : i32, i32
  }
  func.func @transform_7(%arg0: i32, %arg1: i32) -> (i32, i32, i32) {
    %c0_i32 = arith.constant 0 : i32
    %c0_i32_0 = arith.constant 0 : i32
    return %arg0, %c0_i32, %arg1 : i32, i32, i32
  }
}

</mosaic_0001>

<bundles_post_ra>
// kernel: tpu_custom_call.1
= control target key start
LH: loop header
LB: loop body
LE: loop exit
PB: predicated region body
PF: predicated region fallthrough
CT: control target
= control target key end

     0   :  { %12 = vsyncpa [#allocation3], 0  ;;  %s1185_s0 = inlined_call_operand.hbm [shape: f32[2,4,256], index: 0, kind: input, shape index: {}]   ;;  %s1186_s1 = inlined_call_operand.vmem [shape: f32[2,8,256], index: 1, kind: input, shape index: {}]   ;;  %s1187_s2 = inlined_call_operand.vmem [shape: f32[8,4], index: 2, kind: input, shape index: {}]   ;;  %s1188_s3 = inlined_call_operand.vmem [shape: f32[8,8], index: 3, kind: input, shape index: {}]   ;;  %s1189_s4 = inlined_call_operand.vmem [shape: f32[8,1], index: 4, kind: input, shape index: {}]   ;;  %s1190_s5 = inlined_call_operand.vmem [shape: f32[8,8], index: 5, kind: input, shape index: {}]   ;;  %s1191_s6 = inlined_call_operand.vmem [shape: f32[8,1], index: 6, kind: input, shape index: {}]   ;;  %s1192_s7 = inlined_call_operand.hbm [shape: f32[2,8,256], index: 7, kind: output, shape index: {}]  }
   0x1   :  { %14 = vsyncpa [#allocation3 + $0x1], 0 }
   0x2   :  { %15 = vsyncpa [#allocation4], 0 }
   0x3   :  { %17 = vsyncpa [#allocation4 + $0x1], 0  ;;  %s990_s24 = smov 0   ;;  %s992_s25 = smov 0  }
   0x4   :  { %s994_s26 = smov 0   ;;  %s996_s27 = smov 0  }
   0x5   :  { %s998_s28 = smov 0   ;;  %s1000_s29 = smov 0  }
   0x6 LB: > { %s735_s30 = sadd.s32 4294967295, %s944_s29   ;;  %s736_s8 = sadd.s32 4294967294, %s944_s29   ;;  %s944_s29 = sphi %s1000_s29, %s23_s29   ;;  %s940_s28 = sphi %s998_s28, %s1208_s28   ;;  %s936_s27 = sphi %s996_s27, %s1207_s27   ;;  %s932_s26 = sphi %s994_s26, %s1206_s26   ;;  %s928_s25 = sphi %s992_s25, %s1205_s25   ;;  %s924_s24 = sphi %s990_s24, %s1204_s24  }
   0x7   : > { %s35_s9 = sadd.s32 1, %s940_s28  ;;  %s44_s10 = sadd.s32 1, %s932_s26 }
   0x8   : > { %p37_p0 = scmp.ge.s32.totalorder %s35_s9, 2  ;;  %p51_p1 = scmp.ne.s32.totalorder %s932_s26, %s928_s25 }
   0x9   : > { %p52_p2 = scmp.eq.s32.totalorder %s944_s29, 0  ;;  %p57_p3 = scmp.ne.s32.totalorder %s928_s25, %s924_s24 }
   0xa   : > { %s1210_s9 = smov (%p37_p0, %s35_s9), 0  ;;  %p58_p5 = scmp.eq.s32.totalorder %s735_s30, 0 }
   0xb   : > { %p1031_p4 = por %p52_p2, %p51_p1  ;;  %s39_s12 = ssub.s32 %s940_s28, %s1210_s9 }
   0xc   : > { %p216_p6 = scmp.eq.s32.totalorder %s735_s30, 1  ;;  %p42_p7 = scmp.eq.s32.totalorder %s39_s12, 0 }
   0xd   : > { %p1037_p8 = por %p58_p5, %p57_p3  ;;  %p222_p10 = scmp.eq.s32.totalorder %s736_s8, 1 }
   0xe   : > { %p1041_p9 = por %p216_p6, %p51_p1  ;;  %p774_p13 = scmp.lt.s32.totalorder %s944_s29, 2 }
   0xf   : > { %s1046_s15 = scalar_select %p42_p7, %s932_s26, %s44_s10  }
  0x10   : > { %s1196_s14 = scalar_select %p1041_p9, 1, 0 }
  0x11   : > { %p1048_p11 = por %p222_p10, %p57_p3  ;;  %s257_s17 = sand.u32 1, %s932_s26  }
  0x12   : > { %s739_s18 = sshll.u32 %s257_s17, 3  ;;  %s757_s19 = sshll.u32 %s940_s28, 7 }
  0x13   : > { %s1197_s16 = scalar_select %p1048_p11, 1, 0 }
  0x14   : > { %s1059_s22 = scalar_lea.hbm %s1185_s0, %s757_s19  ;;  %s261_s23 = scalar_lea.vmem [#allocation2], %s739_s18 }
  0x15   : > { %s271_s30 = sshll.u32 %s261_s23, 4  ;;  %p1065_p0 = pnand %p774_p13, %p1031_p4  ;;  %s1061_s30 = int_to_ptr.vmem [resolvable:$true] %s271_s30 }
  0x16   : > { %s258_s10 = scalar_lea.sflag [#allocation3], %s257_s17  ;;  %s832_s12 = scalar_lea.hbm %s1059_s22, 128 }
  0x17   : > { %p833_p3 = scmp.ne.s32.totalorder %s1059_s22, %s832_s12  ;;  %p834_p5 = pneg %p1065_p0 }
  0x18   : > { %s837_s11 = scalar_lea.hbm %s1185_s0, 256  ;;  %p838_p4 = scmp.lt.u32.totalorder %s1059_s22, %s1185_s0 }
  0x19   : > { %p835_p6 = pnand %p834_p5, %p833_p3  ;;  %p839_p10 = scmp.lt.u32.totalorder %s837_s11, %s832_s12 }
  0x1a   : > { %p841_p12 = scmp.lt.u32.totalorder %s832_s12, %s1059_s22 }
  0x1b   : > { %p836_p7 = pneg %p835_p6  ;;  %p840_p13 = por %p839_p10, %p838_p4 }
  0x1d   : > { %p842_p1 = por %p841_p12, %p840_p13 }
  0x1f   : > { %p843_p2 = pnand %p842_p1, %p836_p7 }
  0x21   : > { %846 = shalt.err (!%p843_p2)
}
  0x22   : > { %s847_s17 = scalar_lea.vmem %s1061_s30, 128  ;;  %s946_s23 = smov [#allocation2]  }
  0x23   : > { %p848_p3 = scmp.ne.s32.totalorder %s1061_s30, %s847_s17  ;;  %s852_s18 = sshll.u32 %s946_s23, 4  ;;  %s853_s18 = int_to_ptr.vmem [resolvable:$false] %s852_s18 }
  0x24   : > { %s854_s19 = scalar_lea.vmem %s853_s18, 256  ;;  %p855_p9 = scmp.lt.s32.totalorder %s1061_s30, %s853_s18 }
  0x25   : > { %p850_p6 = pnand %p848_p3, %p834_p5  ;;  %p856_p4 = scmp.lt.s32.totalorder %s854_s19, %s847_s17 }
  0x27   : > { %p851_p11 = pneg %p850_p6  ;;  %p857_p10 = por %p856_p4, %p855_p9 }
  0x29   : > { %p858_p12 = pnand %p857_p10, %p851_p11 }
  0x2b   : > { %861 = shalt.err (!%p858_p12)
}
  0x2c   : > { %769 = dma.hbm_to_vmem [thread:$0]  (!%p1065_p0), %s1059_s22, 128, %s1061_s30, %s258_s10  }
  0x2d   : > { %p1199_p1 = scmp.lt.s32.totalorder %s944_s29, 3  ;;  %p1200_p2 = scmp.ge.s32.totalorder %s944_s29, 1 }
  0x2f   : > { %p290_p5 = pnand %p1200_p2, %p1199_p1 }
  0x30   : > { %s1101_s12 = sand.u32 (!%p290_p5), 1, %s928_s25  }
  0x31   : > { %293 = sbr.rel (%p290_p5) target bundleno = 541 (0x21d), region = 48  ;;  %s743_s11 = sshll.u32 (!%p290_p5), %s1101_s12, 3 }
  0x32   : > { %s296_s20 = scalar_lea.sflag (!%p290_p5), [#allocation3], %s1101_s12  ;;  %s299_s21 = scalar_lea.vmem (!%p290_p5), [#allocation2], %s743_s11 }
  0x38   : > { %915 = dma.done.wait (%p1037_p8), %s296_s20, 128  }
  0x39   : > { %917 = vsyncadd (%p1037_p8), %s296_s20, 4294967168  ;;  %p341_p9 = scmp.lt.s32.totalorder %s936_s27, 1  ;;  %v947_v0 = vmov 0.0   ;;  %v948_v1 = vmov 0   ;;  %v355_v4 = vld [vmem:[%s1188_s3] sm:$0xff]  ;;  %vm357_vm0 = vcmask 64512  }
  0x3a   : > { %425 = vmatprep.mubr.f32.mxu0 %v947_v0  ;;  %597 = vmatprep.mubr.f32.mxu1 %v947_v0  ;;  %v351_v5 = vld [vmem:[%s299_s21] sm:$0xff]  ;;  %vm438_vm1 = vcmask 1043456   ;;  %vm434_vm2 = vcmask 31744   ;;  %s744_s10 = sshll.u32 %s1101_s12, 4  ;;  %s617_s20 = scalar_lea.sflag [#allocation4], %s1101_s12 }
  0x3b   : > { %s342_s22 = scalar_select %p341_p9, %s936_s27, 1  ;;  %826 = vset.pattern.permute.xlu0 %v948_v1  ;;  %v514_v6 = vld [vmem:[%s1189_s4] sm:$0xff]  ;;  %v433_v7 = vcombine.high %v351_v5, %v351_v5 }
  0x3c   : > { %517 = vperm.xlu0 %826, %v514_v6   ;;  %v524_v8 = vld [vmem:[%s1191_s6] sm:$0xff]  ;;  %s338_s23 = scalar_lea.vmem [#allocation5], %s744_s10  ;;  %p1201_p11 = scmp.ne.s32.totalorder %s1196_s14, 0 }
  0x3d   : > { %s758_s30 = sshll.u32 %s342_s22, 4  ;;  %v354_v9 = vld [vmem:[%s1187_s2] sm:$0xff]  ;;  %s633_s18 = sshll.u32 %s338_s23, 4  ;;  %s1138_s18 = int_to_ptr.vmem [resolvable:$true] %s633_s18 }
  0x3e   : > { %s348_s17 = scalar_lea.vmem %s1186_s1, %s758_s30  ;;  %v356_v17 = vld [vmem:[%s1190_s5] sm:$0xff]  ;;  %s862_s22 = scalar_lea.vmem %s1138_s18, 256 }
  0x3f   : > { %v353_v2 = vld [vmem:[%s348_s17 + $0x8] sm:$0xff]  ;;  %v352_v3 = vld [vmem:[%s348_s17] sm:$0xff]  ;;  %s759_s17 = sshll.u32 %s936_s27, 8  ;;  %p863_p8 = scmp.ne.s32.totalorder %s1138_s18, %s862_s22 }
  0x40   : > { %361 = vmatprep.subr.mxu0 %v353_v2  ;;  %527 = vperm.xlu0 %826, %v524_v8   ;;  %s1136_s11 = scalar_lea.hbm %s1192_s7, %s759_s17  ;;  %s949_s27 = smov [#allocation5]  }
  0x41   : > { %362 = vmatpush1.msra.mxu0 %v352_v3  ;;  %p864_p0 = pnand %p863_p8, %p1201_p11  ;;  %s866_s21 = sshll.u32 %s949_s27, 4  ;;  %s867_s21 = int_to_ptr.vmem [resolvable:$false] %s866_s21 }
  0x42   : > { %747 = vmatmul.mubr.msk.f32.vlgmr.msra.gmra.mrb[0].mxu0 %vm357_vm0, %v355_v4  ;;  %748 = vmatprep.subr.msk.mxu0 %vm438_vm1, %v433_v7  ;;  %s868_s30 = scalar_lea.vmem %s867_s21, 512  ;;  %p869_p13 = scmp.lt.s32.totalorder %s1138_s18, %s867_s21 }
  0x43   : > { %507 = vmatprep.mubr.f32.mxu0 %v947_v0  ;;  %749 = vmatpush1.msk.msra.mxu0 %vm438_vm1, %v351_v5  ;;  %p865_p7 = pneg %p864_p0  ;;  %p870_p3 = scmp.lt.s32.totalorder %s868_s30, %s862_s22 }
  0x45   : > { %p871_p6 = por %p870_p3, %p869_p13 }
  0x47   : > { %p872_p4 = pnand %p871_p6, %p865_p7 }
  0x4a   : > { %750 = vmatmul.mubr.msk.f32.vlgmr.msra.gmra.mrb[0].mxu0 %vm434_vm2, %v354_v9 }
  0xbb   : > { %v518_v10 = vpop.permute.xlu0 %517 }
  0xbf   : > { %v528_v18 = vpop.permute.xlu0 %527 }
 0x11d   : > { %v509_v11 = vpop.f32.mrb[0].mxu0 }
 0x11e   : > { %v520_v12 = vadd.f32 %v518_v10, %v509_v11  ;;  %v511_v13 = vpop.f32.mrb[1].mxu0 }
 0x11f   : > { %v521_v14 = vadd.f32 %v518_v10, %v511_v13 }
 0x120   : > { %v522_v16 = vmax.f32 %v520_v12, 0.0 }
 0x121   : > { %v523_v15 = vmax.f32 %v521_v14, 0.0 }
 0x123   : > { %533 = vmatprep.subr.mxu1 %v523_v15 }
 0x124   : > { %534 = vmatpush1.msra.mxu1 %v522_v16 }
 0x125   : > { %751 = vmatmul.mubr.msk.f32.vlgmr.msra.gmra.mrb[0].mxu1 %vm357_vm0, %v356_v17 }
 0x1f8   : > { %v599_v19 = vpop.f32.mrb[0].mxu1 }
 0x1f9   : > { %v600_v20 = vadd.f32 %v599_v19, %v528_v18  ;;  %v601_v21 = vpop.f32.mrb[1].mxu1 }
 0x1fa   : > { %v602_v22 = vadd.f32 %v601_v21, %v528_v18 }
 0x1fb   : > { %v604_v23 = vmul.f32 0.5, %v600_v20 }
 0x1fc   : > { %v605_v24 = vmul.f32 0.5, %v602_v22 }
 0x1fd   : > { %828 = vtanh.f32 %v604_v23 }
 0x1fe   : > { %830 = vtanh.f32 %v605_v24 }
 0x207   : > { %v829_v25 = vpop.eup %828 }
 0x208   : > { %v831_v26 = vpop.eup %830  ;;  %v608_v27 = vmul.f32 0.5, %v829_v25 }
 0x209   : > { %v609_v28 = vmul.f32 0.5, %v831_v26 }
 0x20a   : > { %v610_v29 = vadd.f32 0.5, %v608_v27 }
 0x20b   : > { %v611_v30 = vadd.f32 0.5, %v609_v28 }
 0x20c   : > { %v612_v31 = vmul.f32 %v610_v29, %v352_v3 }
 0x20d   : > { %v613_v32 = vmul.f32 %v611_v30, %v353_v2 }
 0x20e   : > { %614 = vst [vmem:[%s338_s23] sm:$0xff] %v612_v31 }
 0x20f   : > { %615 = vst [vmem:[%s338_s23 + $0x8] sm:$0xff] %v613_v32 }
 0x210   : > { %875 = shalt.err (!%p872_p4)
}
 0x211   : > { %s876_s12 = scalar_lea.hbm %s1136_s11, 256  ;;  %s880_s17 = scalar_lea.hbm %s1192_s7, 512 }
 0x212   : > { %p877_p10 = scmp.ne.s32.totalorder %s1136_s11, %s876_s12  ;;  %p881_p2 = scmp.lt.u32.totalorder %s1136_s11, %s1192_s7 }
 0x213   : > { %p882_p5 = scmp.lt.u32.totalorder %s880_s17, %s876_s12  ;;  %p884_p8 = scmp.lt.u32.totalorder %s876_s12, %s1136_s11 }
 0x214   : > { %p878_p12 = pnand %p877_p10, %p1201_p11 }
 0x215   : > { %p883_p9 = por %p882_p5, %p881_p2 }
 0x216   : > { %p879_p1 = pneg %p878_p12 }
 0x217   : > { %p885_p0 = por %p884_p8, %p883_p9 }
 0x219   : > { %p886_p7 = pnand %p885_p0, %p879_p1 }
 0x21b   : > { %889 = shalt.err (!%p886_p7)
}
 0x21c   : > { %764 = dma.vmem_to_hbm [thread:$0]  (%p1201_p11), %s1138_s18, 256, %s1136_s11, %s617_s20  }
 0x21d PF: > { %s645_s19 = sand.u32 1, %s924_s24   ;;  %p1202_p13 = scmp.ne.s32.totalorder %s1197_s16, 0 }
 0x21e   : > { %p1203_p3 = scmp.ge.s32.totalorder %s944_s29, 2  ;;  %s646_s22 = scalar_lea.sflag [#allocation4], %s645_s19 }
 0x220   : > { %p771_p6 = pnand %p1203_p3, %p1202_p13 }
 0x222   : > { %919 = dma.done.wait (!%p771_p6), %s646_s22, 256  }
 0x223   : > { %921 = vsyncadd (!%p771_p6), %s646_s22, 4294967040  ;;  %s23_s29 = sadd.s32 1, %s944_s29   ;;  %s1204_s24 = smov %s928_s25 }
 0x224   : > { %p20_p4 = scmp.ge.s32.totalorder %s23_s29, 4   ;;  %s1205_s25 = smov %s932_s26 }
 0x225   : > { %s1206_s26 = smov %s1046_s15  ;;  %s1207_s27 = smov %s940_s28 }
 0x226   : > { %s1208_s28 = smov %s1210_s9  ;;  %22 = sbr.rel (!%p20_p4) target bundleno = 6 (0x6), region = 96 }
 0x22d   :  { %651 = vsyncpa [#allocation3], 1 }
 0x22e   :  { %653 = vsyncpa [#allocation3 + $0x1], 1 }
 0x22f   :  { %654 = vsyncpa [#allocation4], 1 }
 0x230   :  { %656 = vsyncpa [#allocation4 + $0x1], 1 }

</bundles_post_ra>
